<compile_context>
chip_gen: v5e
topology: v5e:2x2
jax: 0.10.0
libtpu: 0.0.40
codegen_flags: <defaults>
</compile_context>

<pallas_src>
import jax
import jax.numpy as jnp
from jax import lax
from jax.experimental import pallas as pl
from jax.experimental.pallas import tpu as pltpu

# ----------------------- problem sizes (small, synthetic) -------------------
F_IN = 8          # in_features  (node embedding dim)
C_CLS = 4         # cls logits dim per node
P_POLAR = 6       # polar edge feature dim
EDGE_PRED_FEATURES = 2 * C_CLS + P_POLAR   # Din == 2*F_IN + edge_pred_features
HIDDEN = 32       # hidden_dim
OUT_CLASSES = 5   # out_classes
DIN = 2 * F_IN + EDGE_PRED_FEATURES        # 30

N_NODES = 10
N_EDGES = 16

TILE_E = 1024     # edge columns per grid step (multiple of 128); sweepable
LN_EPS = 1e-5


def edge_mlp_kernel(xt_ref, w1_ref, ln_ref, w2_ref, b2_ref, out_ref):
    # xt_ref : (DIN, TILE_E)       bf16  edge features, transposed (lanes = edges)
    # w1_ref : (HIDDEN, DIN)       bf16  PyTorch nn.Linear layout (contract DIN)
    # ln_ref : (HIDDEN, 3)         f32   columns = [b1, gamma, beta]
    # w2_ref : (OUT, HIDDEN)       bf16
    # b2_ref : (OUT, 1)            f32
    # out_ref: (OUT, TILE_E)       f32   lane-dense store

    # MXU matmul 1 (bf16 operands, f32 accumulation): (HIDDEN, TILE_E).
    h = jnp.dot(w1_ref[...], xt_ref[...], preferred_element_type=jnp.float32)

    ln = ln_ref[...]
    b1 = ln[:, 0:1]       # (HIDDEN, 1) -> broadcasts along lanes
    gamma = ln[:, 1:2]
    beta = ln[:, 2:3]

    h = h + b1

    # LayerNorm over the hidden dim (sublane axis 0); two-pass variance.
    mu = jnp.mean(h, axis=0, keepdims=True)           # (1, TILE_E)
    d = h - mu
    var = jnp.mean(d * d, axis=0, keepdims=True)      # (1, TILE_E)
    hn = d * lax.rsqrt(var + LN_EPS) * gamma + beta

    # ReLU (f32).
    hr = jnp.maximum(hn, 0.0)

    # MXU matmul 2: (OUT, HIDDEN) . (HIDDEN, TILE_E) -> (OUT, TILE_E).
    score_t = jnp.dot(w2_ref[...], hr.astype(jnp.bfloat16),
                      preferred_element_type=jnp.float32)

    # Dropout is identity at inference.
    # TODO(synk): training-mode dropout (pltpu.prng_random_bits + mask).
    out_ref[...] = (score_t + b2_ref[...]).astype(out_ref.dtype)


def mlp_predictor_e2e_scores_t(h, cls_logits, polar, src, dst,
                               w1, b1, gamma, beta, w2, b2):
    """Edge scores in transposed (OUT, E) layout (layout-agnostic consumers
    such as loss/argmax should use this directly to avoid an extra HBM pass)."""
    e = polar.shape[0]

    # Per-node softmax once (O(N), not O(2E)); build edge features directly in
    # the TRANSPOSED (DIN, E) bf16 layout the kernel consumes.
    cls_sm = jax.nn.softmax(cls_logits, axis=-1)
    x_t = jnp.concatenate(
        [h[src].T, cls_sm[src].T, polar.T, h[dst].T, cls_sm[dst].T],
        axis=0).astype(jnp.bfloat16)                                 # (DIN, E)
    # TODO(synk): for very large graphs, move the gather in-kernel
    # (PrefetchScalarGridSpec with src/dst scalar-prefetch + resident node
    # tables, sized <= ~48 MiB for v7x VMEM) to avoid materializing x_t in HBM.

    # Pad edge count to a multiple of TILE_E (padded columns sliced off below).
    e_pad = pl.cdiv(e, TILE_E) * TILE_E
    if e_pad != e:
        x_t = jnp.pad(x_t, ((0, 0), (0, e_pad - e)))

    w1_bf = w1.astype(jnp.bfloat16)                                  # (HIDDEN, DIN)
    w2_bf = w2.astype(jnp.bfloat16)                                  # (OUT, HIDDEN)
    ln_params = jnp.stack([b1, gamma, beta], axis=1).astype(jnp.float32)  # (HIDDEN, 3)
    b2_col = b2.reshape(OUT_CLASSES, 1).astype(jnp.float32)          # (OUT, 1)

    score_t = pl.pallas_call(
        edge_mlp_kernel,
        out_shape=jax.ShapeDtypeStruct((OUT_CLASSES, e_pad), jnp.float32),
        grid_spec=pltpu.PrefetchScalarGridSpec(
            num_scalar_prefetch=0,
            grid=(e_pad // TILE_E,),
            in_specs=[
                pl.BlockSpec((DIN, TILE_E), lambda i: (0, i)),
                pl.BlockSpec((HIDDEN, DIN), lambda i: (0, 0)),
                pl.BlockSpec((HIDDEN, 3), lambda i: (0, 0)),
                pl.BlockSpec((OUT_CLASSES, HIDDEN), lambda i: (0, 0)),
                pl.BlockSpec((OUT_CLASSES, 1), lambda i: (0, 0)),
            ],
            out_specs=pl.BlockSpec((OUT_CLASSES, TILE_E), lambda i: (0, i)),
        ),
        compiler_params=pltpu.CompilerParams(
            dimension_semantics=("parallel",),
            vmem_limit_bytes=32 * 1024 * 1024),
    )(x_t, w1_bf, ln_params, w2_bf, b2_col)

    return score_t[:, :e]   # (OUT, E)


def mlp_predictor_e2e(h, cls_logits, polar, src, dst, w1, b1, gamma, beta, w2, b2):
    """Matches the PyTorch module: returns (E, OUT) scores."""
    return mlp_predictor_e2e_scores_t(
        h, cls_logits, polar, src, dst, w1, b1, gamma, beta, w2, b2).T


def reference(h, cls_logits, polar, src, dst, w1, b1, gamma, beta, w2, b2):
    """Pure-JAX reference mirroring the kernel's bf16 operand casts."""
    cls_sm = jax.nn.softmax(cls_logits, axis=-1)
    x = jnp.concatenate(
        [h[src], cls_sm[src], polar, h[dst], cls_sm[dst]], axis=1)
    x = x.astype(jnp.bfloat16).astype(jnp.float32)
    w1f = w1.astype(jnp.bfloat16).astype(jnp.float32)
    w2f = w2.astype(jnp.bfloat16).astype(jnp.float32)
    hh = x @ w1f.T + b1
    mu = jnp.mean(hh, axis=-1, keepdims=True)
    var = jnp.mean((hh - mu) ** 2, axis=-1, keepdims=True)
    hn = (hh - mu) / jnp.sqrt(var + LN_EPS) * gamma + beta
    hr = jnp.maximum(hn, 0.0).astype(jnp.bfloat16).astype(jnp.float32)
    return hr @ w2f.T + b2


if __name__ == "__main__":
    key = jax.random.PRNGKey(0)
    k_h, k_cls, k_polar, k_src, k_dst, k_w1, k_b1, k_w2, k_b2 = jax.random.split(key, 9)

    # node / edge data
    h = jax.random.normal(k_h, (N_NODES, F_IN), dtype=jnp.float32)
    cls = jax.random.normal(k_cls, (N_NODES, C_CLS), dtype=jnp.float32)
    polar = jax.random.normal(k_polar, (N_EDGES, P_POLAR), dtype=jnp.float32)
    src = jax.random.randint(k_src, (N_EDGES,), 0, N_NODES)
    dst = jax.random.randint(k_dst, (N_EDGES,), 0, N_NODES)

    # parameters (PyTorch nn.Linear / nn.LayerNorm layout, synthetic init)
    w1 = jax.random.normal(k_w1, (HIDDEN, DIN), dtype=jnp.float32) * 0.1
    b1 = jax.random.normal(k_b1, (HIDDEN,), dtype=jnp.float32) * 0.1
    gamma = jnp.ones((HIDDEN,), dtype=jnp.float32)     # nn.LayerNorm default
    beta = jnp.zeros((HIDDEN,), dtype=jnp.float32)
    w2 = jax.random.normal(k_w2, (OUT_CLASSES, HIDDEN), dtype=jnp.float32) * 0.1
    b2 = jax.random.normal(k_b2, (OUT_CLASSES,), dtype=jnp.float32) * 0.1

    score = mlp_predictor_e2e(h, cls, polar, src, dst, w1, b1, gamma, beta, w2, b2)
    score = jax.block_until_ready(score)

    ref = reference(h, cls, polar, src, dst, w1, b1, gamma, beta, w2, b2)
    assert score.shape == (N_EDGES, OUT_CLASSES)
    assert jnp.allclose(score, ref, atol=1e-2, rtol=1e-2), "mismatch vs reference"

    print("KERNEL_OK")
</pallas_src>

<mosaic_0001>
module attributes {stable_mosaic.version = 11 : i64} {
  func.func @edge_mlp_kernel(%arg0: i32, %arg1: memref<30x1024xbf16, #tpu.memory_space<vmem>>, %arg2: memref<32x30xbf16, #tpu.memory_space<vmem>>, %arg3: memref<32x3xf32, #tpu.memory_space<vmem>>, %arg4: memref<5x32xbf16, #tpu.memory_space<vmem>>, %arg5: memref<5x1xf32, #tpu.memory_space<vmem>>, %arg6: memref<5x1024xf32, #tpu.memory_space<vmem>>) attributes {dimension_semantics = [#tpu.dimension_semantics<parallel>], iteration_bounds = array<i64: 1>, scalar_prefetch = 0 : i64, scratch_operands = 0 : i64, tpu.core_type = #tpu.core_type<tc>, window_params = [{transform_indices = @transform_0, window_bounds = array<i64: 30, 1024>}, {pipeline_mode = #tpu.pipeline_mode<synchronous>, transform_indices = @transform_1, window_bounds = array<i64: 32, 30>}, {pipeline_mode = #tpu.pipeline_mode<synchronous>, transform_indices = @transform_2, window_bounds = array<i64: 32, 3>}, {pipeline_mode = #tpu.pipeline_mode<synchronous>, transform_indices = @transform_3, window_bounds = array<i64: 5, 32>}, {pipeline_mode = #tpu.pipeline_mode<synchronous>, transform_indices = @transform_4, window_bounds = array<i64: 5, 1>}, {transform_indices = @transform_5, window_bounds = array<i64: 5, 1024>}]} {
    %c0 = arith.constant 0 : index
    %c0_0 = arith.constant 0 : index
    %0 = vector.load %arg2[%c0, %c0_0] : memref<32x30xbf16, #tpu.memory_space<vmem>>, vector<32x30xbf16>
    %c0_1 = arith.constant 0 : index
    %c0_2 = arith.constant 0 : index
    %1 = vector.load %arg1[%c0_1, %c0_2] : memref<30x1024xbf16, #tpu.memory_space<vmem>>, vector<30x1024xbf16>
    %cst = arith.constant dense<0.000000e+00> : vector<32x1024xf32>
    %2 = tpu.matmul %0, %1, %cst {dimension_numbers = #tpu.dot_dimension_numbers<[1], [0], [0], [1], [0, 0, 1, 1], [], []>} : vector<32x30xbf16>, vector<30x1024xbf16>, vector<32x1024xf32> -> vector<32x1024xf32>
    %c0_3 = arith.constant 0 : index
    %c0_4 = arith.constant 0 : index
    %3 = vector.load %arg3[%c0_3, %c0_4] : memref<32x3xf32, #tpu.memory_space<vmem>>, vector<32x3xf32>
    %4 = vector.extract_strided_slice %3 {offsets = [0, 0], sizes = [32, 1], strides = [1, 1]} : vector<32x3xf32> to vector<32x1xf32>
    %5 = vector.extract_strided_slice %3 {offsets = [0, 1], sizes = [32, 1], strides = [1, 1]} : vector<32x3xf32> to vector<32x1xf32>
    %6 = vector.extract_strided_slice %3 {offsets = [0, 2], sizes = [32, 1], strides = [1, 1]} : vector<32x3xf32> to vector<32x1xf32>
    %7 = vector.broadcast %4 : vector<32x1xf32> to vector<32x1024xf32>
    %8 = arith.addf %2, %7 : vector<32x1024xf32>
    %cst_5 = arith.constant dense<0.000000e+00> : vector<1024xf32>
    %9 = vector.multi_reduction <add>, %8, %cst_5 [0] : vector<32x1024xf32> to vector<1024xf32>
    %10 = vector.shape_cast %9 : vector<1024xf32> to vector<1x1024xf32>
    %cst_6 = arith.constant 3.200000e+01 : f32
    %11 = vector.broadcast %cst_6 : f32 to vector<1x1024xf32>
    %12 = arith.divf %10, %11 : vector<1x1024xf32>
    %13 = vector.broadcast %12 : vector<1x1024xf32> to vector<32x1024xf32>
    %14 = arith.subf %8, %13 : vector<32x1024xf32>
    %15 = arith.mulf %14, %14 : vector<32x1024xf32>
    %cst_7 = arith.constant dense<0.000000e+00> : vector<1024xf32>
    %16 = vector.multi_reduction <add>, %15, %cst_7 [0] : vector<32x1024xf32> to vector<1024xf32>
    %17 = vector.shape_cast %16 : vector<1024xf32> to vector<1x1024xf32>
    %cst_8 = arith.constant 3.200000e+01 : f32
    %18 = vector.broadcast %cst_8 : f32 to vector<1x1024xf32>
    %19 = arith.divf %17, %18 : vector<1x1024xf32>
    %cst_9 = arith.constant 9.99999974E-6 : f32
    %20 = vector.broadcast %cst_9 : f32 to vector<1x1024xf32>
    %21 = arith.addf %19, %20 : vector<1x1024xf32>
    %22 = math.rsqrt %21 : vector<1x1024xf32>
    %23 = vector.broadcast %22 : vector<1x1024xf32> to vector<32x1024xf32>
    %24 = arith.mulf %14, %23 : vector<32x1024xf32>
    %25 = vector.broadcast %5 : vector<32x1xf32> to vector<32x1024xf32>
    %26 = arith.mulf %24, %25 : vector<32x1024xf32>
    %27 = vector.broadcast %6 : vector<32x1xf32> to vector<32x1024xf32>
    %28 = arith.addf %26, %27 : vector<32x1024xf32>
    %cst_10 = arith.constant 0.000000e+00 : f32
    %29 = vector.broadcast %cst_10 : f32 to vector<32x1024xf32>
    %30 = arith.maximumf %28, %29 : vector<32x1024xf32>
    %c0_11 = arith.constant 0 : index
    %c0_12 = arith.constant 0 : index
    %31 = vector.load %arg4[%c0_11, %c0_12] : memref<5x32xbf16, #tpu.memory_space<vmem>>, vector<5x32xbf16>
    %32 = arith.truncf %30 : vector<32x1024xf32> to vector<32x1024xbf16>
    %cst_13 = arith.constant dense<0.000000e+00> : vector<5x1024xf32>
    %33 = tpu.matmul %31, %32, %cst_13 {dimension_numbers = #tpu.dot_dimension_numbers<[1], [0], [0], [1], [0, 0, 1, 1], [], []>} : vector<5x32xbf16>, vector<32x1024xbf16>, vector<5x1024xf32> -> vector<5x1024xf32>
    %c0_14 = arith.constant 0 : index
    %c0_15 = arith.constant 0 : index
    %34 = vector.load %arg5[%c0_14, %c0_15] : memref<5x1xf32, #tpu.memory_space<vmem>>, vector<5x1xf32>
    %35 = vector.broadcast %34 : vector<5x1xf32> to vector<5x1024xf32>
    %36 = arith.addf %33, %35 : vector<5x1024xf32>
    %c0_16 = arith.constant 0 : index
    %c0_17 = arith.constant 0 : index
    %37 = vector.load %arg6[%c0_16, %c0_17] : memref<5x1024xf32, #tpu.memory_space<vmem>>, vector<5x1024xf32>
    tpu.vector_store %arg6[%c0_16, %c0_17], %36 {strides = array<i32>} : memref<5x1024xf32, #tpu.memory_space<vmem>>, vector<5x1024xf32>,
    return
  }
  func.func @transform_0(%arg0: i32) -> (i32, i32) {
    %c0_i32 = arith.constant 0 : i32
    %c0_i32_0 = arith.constant 0 : i32
    return %c0_i32, %arg0 : i32, i32
  }
  func.func @transform_1(%arg0: i32) -> (i32, i32) {
    %c0_i32 = arith.constant 0 : i32
    %c0_i32_0 = arith.constant 0 : i32
    %c0_i32_1 = arith.constant 0 : i32
    return %c0_i32, %c0_i32_0 : i32, i32
  }
  func.func @transform_2(%arg0: i32) -> (i32, i32) {
    %c0_i32 = arith.constant 0 : i32
    %c0_i32_0 = arith.constant 0 : i32
    %c0_i32_1 = arith.constant 0 : i32
    return %c0_i32, %c0_i32_0 : i32, i32
  }
  func.func @transform_3(%arg0: i32) -> (i32, i32) {
    %c0_i32 = arith.constant 0 : i32
    %c0_i32_0 = arith.constant 0 : i32
    %c0_i32_1 = arith.constant 0 : i32
    return %c0_i32, %c0_i32_0 : i32, i32
  }
  func.func @transform_4(%arg0: i32) -> (i32, i32) {
    %c0_i32 = arith.constant 0 : i32
    %c0_i32_0 = arith.constant 0 : i32
    %c0_i32_1 = arith.constant 0 : i32
    return %c0_i32, %c0_i32_0 : i32, i32
  }
  func.func @transform_5(%arg0: i32) -> (i32, i32) {
    %c0_i32 = arith.constant 0 : i32
    %c0_i32_0 = arith.constant 0 : i32
    return %c0_i32, %arg0 : i32, i32
  }
}

</mosaic_0001>

<bundles_post_ra>
// kernel: tpu_custom_call.1
= control target key start
LH: loop header
LB: loop body
LE: loop exit
PB: predicated region body
PF: predicated region fallthrough
CT: control target
= control target key end

     0   :  { %10 = vsyncpa [#allocation3], 0  ;;  %s1831_s0 = inlined_call_operand.hbm [shape: bf16[30,1024], index: 0, kind: input, shape index: {}]   ;;  %s1832_s1 = inlined_call_operand.vmem [shape: bf16[32,30], index: 1, kind: input, shape index: {}]   ;;  %s1833_s2 = inlined_call_operand.vmem [shape: f32[32,3], index: 2, kind: input, shape index: {}]   ;;  %s1834_s3 = inlined_call_operand.vmem [shape: bf16[5,32], index: 3, kind: input, shape index: {}]   ;;  %s1835_s4 = inlined_call_operand.vmem [shape: f32[5,1], index: 4, kind: input, shape index: {}]   ;;  %s1836_s5 = inlined_call_operand.hbm [shape: f32[5,1024], index: 5, kind: output, shape index: {}]  }
   0x1   :  { %11 = vsyncpa [#allocation4], 0  ;;  %s16_s20 = sshll.u32 %s1831_s0, 4  ;;  %s1184_s21 = smov [#allocation2]   ;;  %s17_s20 = int_to_ptr.hbm [resolvable:$true] %s16_s20 }
   0x2   :  { %s18_s22 = sshll.u32 %s1184_s21, 4  ;;  %s1185_s23 = smov 512   ;;  %s19_s22 = int_to_ptr.vmem [resolvable:$true] %s18_s22 }
   0x3   :  { %s1186_s24 = smov 32  }
   0x4   :  { %24 = dma.hbm_to_vmem [thread:$0]  %s17_s20, 2048, %s19_s22, [#allocation3], %s1185_s23, %s1185_s23, %s1186_s24  }
   0x5   :  { %1180 = dma.done.wait [#allocation3], 2048  }
   0x6   :  { %1181 = vsyncadd [#allocation3], 4294965248  ;;  %v1187_v0 = vmov 0   ;;  %vm171_vm0 = vcmask 1046528   ;;  %v1025_v1 = vld [vmem:[#allocation2 + $0x40] sm:$0xf] }
   0x7   :  { %1105 = vset.pattern.permute.xlu0 %v1187_v0  ;;  %1106 = vset.pattern.permute.xlu1 %v1187_v0  ;;  %v1093_v2 = vld [vmem:[#allocation2 + $0x5c] sm:$0x70]  ;;  %v1089_v3 = vld [vmem:[#allocation2 + $0x44] sm:$0xf]  ;;  %v1033_v6 = vld [vmem:[#allocation2 + $0x48] sm:$0xf] }
   0x8   :  { %v1026_v4 = vor.u32 %v1093_v2, %v1025_v1  ;;  %v1027_v5 = vld [vmem:[#allocation2 + $0x60] sm:$0x70]  ;;  %v1094_v7 = vld [vmem:[#allocation2 + $0x64] sm:$0x70]  ;;  %v1090_v10 = vld [vmem:[#allocation2 + $0x4c] sm:$0xf] }
   0x9   :  { %v1030_v8 = vor.u32 %v1089_v3, %v1027_v5  ;;  %v1034_v9 = vor.u32 %v1094_v7, %v1033_v6  ;;  %v1035_v11 = vld [vmem:[#allocation2 + $0x68] sm:$0x70]  ;;  %v993_v12 = vld [vmem:[#allocation2] sm:$0xf]  ;;  %v1081_v16 = vld [vmem:[#allocation2 + $0x4] sm:$0xf] }
   0xa   :  { %v173_v13 = vsel %vm171_vm0, %v1026_v4, 0  ;;  %v1038_v14 = vor.u32 %v1090_v10, %v1035_v11  ;;  %v1085_v15 = vld [vmem:[#allocation2 + $0x1c] sm:$0xf0]  ;;  %v995_v20 = vld [vmem:[#allocation2 + $0x20] sm:$0xf0]  ;;  %vm164_vm1 = vcmask 244736  }
   0xb   :  { %202 = vmatpush.bf16.msra.mxu0 %v173_v13  ;;  %v176_v17 = vsel %vm171_vm0, %v1030_v8, 0  ;;  %v179_v18 = vsel %vm171_vm0, %v1034_v9, 0  ;;  %v994_v19 = vor.u32 %v1085_v15, %v993_v12  ;;  %v1001_v21 = vld [vmem:[#allocation2 + $0x8] sm:$0xf]  ;;  %v998_v23 = vor.u32 %v1081_v16, %v995_v20  ;;  %v1082_v25 = vld [vmem:[#allocation2 + $0xc] sm:$0xf] }
   0xc   :  { %221 = vmatpush.bf16.msra.mxu1 %v176_v17  ;;  %240 = vmatpush.bf16.msra.mxu2 %v179_v18  ;;  %v182_v22 = vsel %vm171_vm0, %v1038_v14, 0  ;;  %v1086_v24 = vld [vmem:[#allocation2 + $0x24] sm:$0xf0]  ;;  %v1234_v26 = vld [vmem:[%s1833_s2] sm:$0xff]  ;;  %v1003_v28 = vld [vmem:[#allocation2 + $0x28] sm:$0xf0] }
   0xd   :  { %259 = vmatpush.bf16.msra.mxu3 %v182_v22  ;;  %v1002_v27 = vor.u32 %v1086_v24, %v1001_v21  ;;  %v1049_v29 = vld [vmem:[#allocation2 + $0x58] sm:$0xf]  ;;  %64 = vperm.xlu0 %1105, %v1234_v26   ;;  %v1006_v31 = vor.u32 %v1082_v25, %v1003_v28  ;;  %v1240_v32 = vld [vmem:[%s1832_s1] sm:$0xff]  ;;  %v1092_v34 = vld [vmem:[#allocation2 + $0x5c] sm:$0xf]  ;;  %v1188_v63 = vmov 2  }
   0xe   :  { %v1096_v30 = vld [vmem:[#allocation2 + $0x74] sm:$0x70]  ;;  %v1051_v35 = vld [vmem:[#allocation2 + $0x78] sm:$0x70]  ;;  %v1041_v37 = vld [vmem:[#allocation2 + $0x50] sm:$0xf] }
   0xf   :  { %v1050_v33 = vor.u32 %v1096_v30, %v1049_v29  ;;  %203 = vmatpush.bf16.msra.mxu0 %v994_v19  ;;  %v1054_v36 = vor.u32 %v1092_v34, %v1051_v35  ;;  %v1095_v38 = vld [vmem:[#allocation2 + $0x6c] sm:$0x70]  ;;  %v1091_v39 = vld [vmem:[#allocation2 + $0x54] sm:$0xf]  ;;  %v1017_v45 = vld [vmem:[#allocation2 + $0x18] sm:$0xf] }
  0x10   :  { %222 = vmatpush.bf16.msra.mxu1 %v998_v23  ;;  %241 = vmatpush.bf16.msra.mxu2 %v1002_v27  ;;  %v1042_v41 = vor.u32 %v1095_v38, %v1041_v37  ;;  %v1043_v42 = vld [vmem:[#allocation2 + $0x70] sm:$0x70]  ;;  %v1088_v46 = vld [vmem:[#allocation2 + $0x34] sm:$0xf0]  ;;  %v59_v48 = vld [vmem:[%s1833_s2 + $0x8] sm:$0xff]  ;;  %v1189_v1 = vmov 1  }
  0x11   :  { %v191_v40 = vsel %vm171_vm0, %v1050_v33, 0  ;;  %260 = vmatpush.bf16.msra.mxu3 %v1006_v31  ;;  %v194_v43 = vsel %vm171_vm0, %v1054_v36, 0  ;;  %v1046_v44 = vor.u32 %v1091_v39, %v1043_v42  ;;  %v1018_v49 = vor.u32 %v1088_v46, %v1017_v45  ;;  %v1084_v50 = vld [vmem:[#allocation2 + $0x1c] sm:$0xf]  ;;  %v60_v53 = vld [vmem:[%s1833_s2 + $0x10] sm:$0xff]  ;;  %v1080_v62 = vld [vmem:[%s1832_s1 + $0x8] sm:$0xff]  ;;  %1107 = vset.pattern.permute.xlu2 %v1189_v1 }
  0x12   :  { %1055 = vmatmul.msk.bf16.vlgmr.msra.gmra.mxu0 %vm164_vm1, %v1240_v32  ;;  %v185_v47 = vsel %vm171_vm0, %v1042_v41, 0  ;;  %v1019_v51 = vld [vmem:[#allocation2 + $0x38] sm:$0xf0]  ;;  %v1009_v55 = vld [vmem:[#allocation2 + $0x10] sm:$0xf]  ;;  %74 = vperm.xlu1 %1106, %v60_v53   ;;  %v1190_v9 = vmov 32.0  }
  0x13   :  { %1057 = vmatmul.msk.bf16.vlgmr.msra.gmra.mxu1 %vm164_vm1, %v1240_v32  ;;  %1059 = vmatmul.msk.bf16.vlgmr.msra.gmra.mxu2 %vm164_vm1, %v1240_v32  ;;  %v188_v52 = vsel %vm171_vm0, %v1046_v44, 0  ;;  %v1022_v54 = vor.u32 %v1084_v50, %v1019_v51  ;;  %v1087_v56 = vld [vmem:[#allocation2 + $0x2c] sm:$0xf0]  ;;  %v1083_v58 = vld [vmem:[#allocation2 + $0x14] sm:$0xf]  ;;  %v61_v61 = vld [vmem:[%s1833_s2 + $0x18] sm:$0xff]  ;;  %1114 = vrcp.f32 %v1190_v9 }
  0x14   :  { %316 = vmatpush.bf16.msrb.mxu2 %v191_v40  ;;  %1061 = vmatmul.msk.bf16.vlgmr.msra.gmra.mxu3 %vm164_vm1, %v1240_v32  ;;  %v1010_v57 = vor.u32 %v1087_v56, %v1009_v55  ;;  %v1011_v59 = vld [vmem:[#allocation2 + $0x30] sm:$0xf0]  ;;  %s973_s15 = sshll.u32 %s1836_s5, 4  ;;  %s974_s15 = int_to_ptr.hbm [resolvable:$true] %s973_s15 }
  0x15   :  { %335 = vmatpush.bf16.msrb.mxu3 %v194_v43  ;;  %278 = vmatpush.bf16.msrb.mxu0 %v185_v47  ;;  %v1014_v60 = vor.u32 %v1083_v58, %v1011_v59 }
  0x16   :  { %297 = vmatpush.bf16.msrb.mxu1 %v188_v52  ;;  %69 = vperm.xlu0 %1105, %v59_v48  }
  0x17   :  { %708 = vperm.xlu2 %1107, %v60_v53  }
  0x18   :  { %317 = vmatpush.bf16.msrb.mxu2 %v1018_v49 }
  0x19   :  { %336 = vmatpush.bf16.msrb.mxu3 %v1022_v54  ;;  %279 = vmatpush.bf16.msrb.mxu0 %v1010_v57  ;;  %v1115_v15 = vpop.eup %1114 }
  0x1a   :  { %298 = vmatpush.bf16.msrb.mxu1 %v1014_v60  ;;  %79 = vperm.xlu1 %1106, %v61_v61   ;;  %v421_v23 = vmul.f32 32.0, %v1115_v15  ;;  %vm425_vm2 = vweird.f32 %v1115_v15 }
  0x1c   :  { %v422_v34 = vsub.f32 1.0, %v421_v23 }
  0x1e   :  { %1108 = vset.pattern.permute.xlu0 %v1188_v63  ;;  %v423_v45 = vmul.f32 %v1115_v15, %v422_v34 }
  0x1f   :  { %756 = vperm.xlu0 %1108, %v60_v53   ;;  %712 = vperm.xlu2 %1107, %v61_v61  }
  0x20   :  { %v424_v59 = vadd.f32 %v1115_v15, %v423_v45 }
  0x22   :  { %1056 = vmatmul.msk.bf16.gmra.mxu0 %vm164_vm1, %v1080_v62  ;;  %1109 = vset.pattern.permute.xlu1 %v1188_v63 }
  0x23   :  { %1058 = vmatmul.msk.bf16.gmra.mxu1 %vm164_vm1, %v1080_v62  ;;  %1060 = vmatmul.msk.bf16.gmra.mxu2 %vm164_vm1, %v1080_v62 }
  0x24   :  { %1062 = vmatmul.msk.bf16.gmra.mxu3 %vm164_vm1, %v1080_v62  ;;  %760 = vperm.xlu1 %1109, %v61_v61  }
  0x27   :  { %752 = vperm.xlu0 %1108, %v59_v48   ;;  %700 = vperm.xlu2 %1107, %v1234_v26  }
  0x2c   :  { %1110 = vset.pattern.permute.xlu1 %v1189_v1 }
  0x2d   :  { %704 = vperm.xlu1 %1110, %v59_v48  }
  0x2f   :  { %1113 = vset.pattern.permute.xlu0 %v1187_v0  ;;  %1111 = vset.pattern.permute.xlu2 %v1188_v63 }
  0x30   :  { %748 = vperm.xlu2 %1111, %v1234_v26  }
  0x32   :  { %1063 = vmatmul.msk.bf16.vlgmr.msrb.gmra.mxu0 %vm164_vm1, %v1240_v32 }
  0x33   :  { %1065 = vmatmul.msk.bf16.vlgmr.msrb.gmra.mxu1 %vm164_vm1, %v1240_v32  ;;  %1067 = vmatmul.msk.bf16.vlgmr.msrb.gmra.mxu2 %vm164_vm1, %v1240_v32 }
  0x34   :  { %1069 = vmatmul.msk.bf16.vlgmr.msrb.gmra.mxu3 %vm164_vm1, %v1240_v32 }
  0x35   :  { %1112 = vset.pattern.permute.xlu1 %v1187_v0 }
  0x42   :  { %1064 = vmatmul.msk.bf16.gmra.mxu0 %vm164_vm1, %v1080_v62 }
  0x43   :  { %1066 = vmatmul.msk.bf16.gmra.mxu1 %vm164_vm1, %v1080_v62  ;;  %1068 = vmatmul.msk.bf16.gmra.mxu2 %vm164_vm1, %v1080_v62 }
  0x44   :  { %1070 = vmatmul.msk.bf16.gmra.mxu3 %vm164_vm1, %v1080_v62 }
  0x7f   :  { %v1286_v4 = vpop.permute.xlu0 %64 }
  0x84   :  { %v1288_v0 = vpop.permute.xlu1 %74 }
  0x88   :  { %v1290_v10 = vpop.permute.xlu0 %69 }
  0x8c   :  { %v1310_v22 = vpop.permute.xlu1 %79 }
  0x8f   :  { %v205_v2 = vpop.f32.mrf.mxu0 }
  0x90   :  { %v224_v3 = vpop.f32.mrf.mxu1  ;;  %v1293_v16 = vadd.f32 %v205_v2, %v1286_v4 }
  0x91   :  { %v1299_v18 = vadd.f32 %v224_v3, %v1286_v4 }
  0x96   :  { %v243_v5 = vpop.f32.mrf.mxu2 }
  0x97   :  { %v262_v6 = vpop.f32.mrf.mxu3  ;;  %v207_v7 = vpop.f32.mrf.mxu0  ;;  %v1330_v38 = vadd.f32 %v243_v5, %v1286_v4 }
  0x98   :  { %v226_v8 = vpop.f32.mrf.mxu1  ;;  %v1296_v17 = vadd.f32 %v207_v7, %v1290_v10  ;;  %v1336_v41 = vadd.f32 %v262_v6, %v1286_v4  ;;  %v1355_v6 = vsel %vm425_vm2, %v1115_v15, %v424_v59 }
  0x99   :  { %v1302_v19 = vadd.f32 %v226_v8, %v1290_v10 }
  0x9a   :  { %v348_v24 = vadd.f32 %v1296_v17, %v1293_v16 }
  0x9b   :  { %v357_v26 = vadd.f32 %v1302_v19, %v1299_v18 }
  0x9e   :  { %v245_v11 = vpop.f32.mrf.mxu2 }
  0x9f   :  { %v264_v12 = vpop.f32.mrf.mxu3  ;;  %v210_v13 = vpop.f32.mrf.mxu0  ;;  %v1321_v32 = vadd.f32 %v245_v11, %v1290_v10 }
  0xa0   :  { %v229_v14 = vpop.f32.mrf.mxu1  ;;  %v1305_v20 = vadd.f32 %v210_v13, %v1288_v0  ;;  %v1326_v36 = vadd.f32 %v264_v12, %v1290_v10 }
  0xa1   :  { %v1308_v21 = vadd.f32 %v229_v14, %v1288_v0  ;;  %v366_v44 = vadd.f32 %v1321_v32, %v1330_v38 }
  0xa2   :  { %v349_v29 = vadd.f32 %v348_v24, %v1305_v20  ;;  %v375_v47 = vadd.f32 %v1326_v36, %v1336_v41 }
  0xa3   :  { %v358_v33 = vadd.f32 %v357_v26, %v1308_v21 }
  0xa6   :  { %v248_v25 = vpop.f32.mrf.mxu2 }
  0xa7   :  { %v267_v27 = vpop.f32.mrf.mxu3  ;;  %v212_v28 = vpop.f32.mrf.mxu0  ;;  %v1333_v39 = vadd.f32 %v248_v25, %v1288_v0 }
  0xa8   :  { %v1318_v30 = vadd.f32 %v212_v28, %v1310_v22  ;;  %v231_v31 = vpop.f32.mrf.mxu1  ;;  %v1339_v42 = vadd.f32 %v267_v27, %v1288_v0 }
  0xa9   :  { %v232_v35 = vadd.f32 %v231_v31, %v1310_v22  ;;  %v367_v50 = vadd.f32 %v366_v44, %v1333_v39 }
  0xaa   :  { %v350_v37 = vadd.f32 %v349_v29, %v1318_v30  ;;  %v376_v55 = vadd.f32 %v375_v47, %v1339_v42 }
  0xab   :  { %v359_v40 = vadd.f32 %v358_v33, %v232_v35 }
  0xac   :  { %v351_v43 = vrot.slane %v350_v37, 4 }
  0xad   :  { %v360_v46 = vrot.slane %v359_v40, 4 }
  0xae   :  { %v352_v48 = vadd.f32 %v351_v43, %v350_v37  ;;  %v250_v49 = vpop.f32.mrf.mxu2 }
  0xaf   :  { %v361_v51 = vadd.f32 %v360_v46, %v359_v40  ;;  %v1347_v52 = vadd.f32 %v250_v49, %v1310_v22  ;;  %v269_v53 = vpop.f32.mrf.mxu3  ;;  %v281_v54 = vpop.f32.mrf.mxu0 }
  0xb0   :  { %v353_v56 = vrot.slane %v352_v48, 2  ;;  %v1351_v57 = vadd.f32 %v269_v53, %v1310_v22  ;;  %v300_v58 = vpop.f32.mrf.mxu1  ;;  %v1360_v29 = vadd.f32 %v281_v54, %v1286_v4 }
  0xb1   :  { %v362_v60 = vrot.slane %v361_v51, 2  ;;  %v368_v61 = vadd.f32 %v367_v50, %v1347_v52  ;;  %v1363_v15 = vadd.f32 %v300_v58, %v1286_v4 }
  0xb2   :  { %v354_v62 = vadd.f32 %v353_v56, %v352_v48  ;;  %v377_v63 = vadd.f32 %v376_v55, %v1351_v57 }
  0xb3   :  { %v363_v1 = vadd.f32 %v362_v60, %v361_v51  ;;  %v369_v2 = vrot.slane %v368_v61, 4 }
  0xb4   :  { %v355_v3 = vrot.slane %v354_v62, 1  ;;  %v378_v5 = vrot.slane %v377_v63, 4 }
  0xb5   :  { %v364_v7 = vrot.slane %v363_v1, 1  ;;  %v370_v8 = vadd.f32 %v369_v2, %v368_v61 }
  0xb6   :  { %v356_v9 = vadd.f32 %v355_v3, %v354_v62  ;;  %v379_v11 = vadd.f32 %v378_v5, %v377_v63  ;;  %v319_v12 = vpop.f32.mrf.mxu2 }
  0xb7   :  { %v365_v13 = vadd.f32 %v364_v7, %v363_v1  ;;  %v371_v14 = vrot.slane %v370_v8, 2  ;;  %v338_v23 = vpop.f32.mrf.mxu3  ;;  %v283_v24 = vpop.f32.mrf.mxu0  ;;  %v1384_v45 = vadd.f32 %v319_v12, %v1286_v4 }
  0xb8   :  { %v427_v25 = vmul.f32 %v1355_v6, %v356_v9  ;;  %v302_v26 = vpop.f32.mrf.mxu1  ;;  %v380_v28 = vrot.slane %v379_v11, 2 }
  0xb9   :  { %v428_v27 = vmul.f32 %v1355_v6, %v365_v13  ;;  %v372_v37 = vadd.f32 %v371_v14, %v370_v8  ;;  %v1410_v53 = vadd.f32 %v302_v26, %v1290_v10 }
  0xba   :  { %v1366_v31 = vsub.f32 %v1293_v16, %v427_v25  ;;  %v1369_v33 = vsub.f32 %v1296_v17, %v427_v25  ;;  %v1372_v34 = vsub.f32 %v1305_v20, %v427_v25  ;;  %v1387_v16 = vsub.f32 %v1318_v30, %v427_v25 }
  0xbb   :  { %v1375_v40 = vsub.f32 %v1299_v18, %v428_v27  ;;  %v1378_v43 = vsub.f32 %v1302_v19, %v428_v27  ;;  %v1381_v44 = vsub.f32 %v1308_v21, %v428_v27  ;;  %v1394_v18 = vadd.f32 %v338_v23, %v1286_v4 }
  0xbc   :  { %v467_v17 = vmul.f32 %v1366_v31, %v1366_v31  ;;  %v475_v20 = vmul.f32 %v1369_v33, %v1369_v33  ;;  %v1396_v19 = vsub.f32 %v232_v35, %v428_v27  ;;  %v1403_v30 = vadd.f32 %v283_v24, %v1290_v10 }
  0xbd   :  { %v468_v21 = vmul.f32 %v1375_v40, %v1375_v40  ;;  %v476_v46 = vmul.f32 %v1378_v43, %v1378_v43  ;;  %v483_v47 = vmul.f32 %v1372_v34, %v1372_v34  ;;  %v373_v49 = vrot.slane %v372_v37, 1 }
  0xbe   :  { %v499_v48 = vadd.f32 %v475_v20, %v467_v17  ;;  %v381_v50 = vadd.f32 %v380_v28, %v379_v11  ;;  %v321_v51 = vpop.f32.mrf.mxu2  ;;  %v484_v4 = vmul.f32 %v1381_v44, %v1381_v44  ;;  %v491_v58 = vmul.f32 %v1387_v16, %v1387_v16 }
  0xbf   :  { %v508_v35 = vadd.f32 %v476_v46, %v468_v21  ;;  %v1413_v54 = vadd.f32 %v321_v51, %v1290_v10  ;;  %v340_v55 = vpop.f32.mrf.mxu3  ;;  %v286_v56 = vpop.f32.mrf.mxu0  ;;  %v374_v60 = vadd.f32 %v373_v49, %v372_v37  ;;  %v492_v63 = vmul.f32 %v1396_v19, %v1396_v19 }
  0xc0   :  { %v500_v59 = vadd.f32 %v499_v48, %v483_v47  ;;  %v382_v61 = vrot.slane %v381_v50, 1  ;;  %v305_v62 = vpop.f32.mrf.mxu1  ;;  %v1420_v2 = vadd.f32 %v340_v55, %v1290_v10  ;;  %v1423_v3 = vadd.f32 %v286_v56, %v1288_v0 }
  0xc1   :  { %v509_v1 = vadd.f32 %v508_v35, %v484_v4  ;;  %v429_v7 = vmul.f32 %v1355_v6, %v374_v60  ;;  %v384_v9 = vadd.f32 %v1403_v30, %v1360_v29  ;;  %v393_v12 = vadd.f32 %v1410_v53, %v1363_v15 }
  0xc2   :  { %v501_v5 = vadd.f32 %v500_v59, %v491_v58  ;;  %v383_v8 = vadd.f32 %v382_v61, %v381_v50  ;;  %v402_v13 = vadd.f32 %v1413_v54, %v1384_v45  ;;  %v1433_v10 = vadd.f32 %v305_v62, %v1288_v0 }
  0xc3   :  { %v510_v11 = vadd.f32 %v509_v1, %v492_v63  ;;  %v1436_v23 = vsub.f32 %v1330_v38, %v429_v7  ;;  %v1439_v24 = vsub.f32 %v1321_v32, %v429_v7  ;;  %v1442_v25 = vsub.f32 %v1333_v39, %v429_v7 }
  0xc4   :  { %v502_v14 = vrot.slane %v501_v5, 4  ;;  %v430_v27 = vmul.f32 %v1355_v6, %v383_v8  ;;  %v411_v28 = vadd.f32 %v1420_v2, %v1394_v18  ;;  %v385_v37 = vadd.f32 %v384_v9, %v1423_v3 }
  0xc5   :  { %v511_v26 = vrot.slane %v510_v11, 4  ;;  %v1449_v20 = vsub.f32 %v1347_v52, %v429_v7  ;;  %v469_v38 = vmul.f32 %v1436_v23, %v1436_v23  ;;  %v477_v32 = vmul.f32 %v1439_v24, %v1439_v24 }
  0xc6   :  { %v503_v17 = vadd.f32 %v502_v14, %v501_v5  ;;  %v324_v39 = vpop.f32.mrf.mxu2  ;;  %v485_v46 = vmul.f32 %v1442_v25, %v1442_v25  ;;  %v1458_v47 = vsub.f32 %v1336_v41, %v430_v27  ;;  %v1461_v48 = vsub.f32 %v1326_v36, %v430_v27 }
  0xc7   :  { %v512_v21 = vadd.f32 %v511_v26, %v510_v11  ;;  %v343_v49 = vpop.f32.mrf.mxu3  ;;  %v517_v50 = vadd.f32 %v477_v32, %v469_v38  ;;  %v1464_v51 = vsub.f32 %v1339_v42, %v430_v27  ;;  %v1467_v4 = vsub.f32 %v1351_v57, %v430_v27  ;;  %v288_v36 = vpop.f32.mrf.mxu0 }
  0xc8   :  { %v504_v52 = vrot.slane %v503_v17, 2  ;;  %v470_v55 = vmul.f32 %v1458_v47, %v1458_v47  ;;  %v478_v41 = vmul.f32 %v1461_v48, %v1461_v48  ;;  %v1474_v56 = vadd.f32 %v324_v39, %v1288_v0  ;;  %v307_v58 = vpop.f32.mrf.mxu1 }
  0xc9   :  { %v513_v35 = vrot.slane %v512_v21, 2  ;;  %v493_v42 = vmul.f32 %v1449_v20, %v1449_v20  ;;  %v518_v60 = vadd.f32 %v517_v50, %v485_v46  ;;  %v394_v57 = vadd.f32 %v393_v12, %v1433_v10 }
  0xca   :  { %v505_v59 = vadd.f32 %v504_v52, %v503_v17  ;;  %v486_v62 = vmul.f32 %v1464_v51, %v1464_v51  ;;  %v526_v63 = vadd.f32 %v478_v41, %v470_v55  ;;  %v1482_v1 = vadd.f32 %v343_v49, %v1288_v0 }
  0xcb   :  { %v514_v61 = vadd.f32 %v513_v35, %v512_v21  ;;  %v519_v7 = vadd.f32 %v518_v60, %v493_v42  ;;  %v1485_v8 = vadd.f32 %v288_v36, %v1310_v22  ;;  %v1488_v9 = vadd.f32 %v307_v58, %v1310_v22 }
  0xcc   :  { %v506_v5 = vrot.slane %v505_v59, 1  ;;  %v494_v12 = vmul.f32 %v1467_v4, %v1467_v4  ;;  %v527_v14 = vadd.f32 %v526_v63, %v486_v62  ;;  %v403_v26 = vadd.f32 %v402_v13, %v1474_v56 }
  0xcd   :  { %v515_v11 = vrot.slane %v514_v61, 1  ;;  %v520_v17 = vrot.slane %v519_v7, 4  ;;  %v386_v0 = vadd.f32 %v385_v37, %v1485_v8  ;;  %v395_v38 = vadd.f32 %v394_v57, %v1488_v9 }
  0xce   :  { %v507_v27 = vadd.f32 %v506_v5, %v505_v59  ;;  %v326_v32 = vpop.f32.mrf.mxu2  ;;  %v528_v21 = vadd.f32 %v527_v14, %v494_v12  ;;  %v412_v46 = vadd.f32 %v411_v28, %v1482_v1 }
  0xcf   :  { %v516_v39 = vadd.f32 %v515_v11, %v514_v61  ;;  %v1497_v49 = vadd.f32 %v326_v32, %v1310_v22  ;;  %v345_v52 = vpop.f32.mrf.mxu3  ;;  %v521_v35 = vadd.f32 %v520_v17, %v519_v7  ;;  %v387_v55 = vrot.slane %v386_v0, 4 }
  0xd0   :  { %v571_v50 = vmul.f32 %v507_v27, %v1355_v6  ;;  %v396_v13 = vrot.slane %v395_v38, 4  ;;  %v529_v36 = vrot.slane %v528_v21, 4  ;;  %v1503_v58 = vadd.f32 %v345_v52, %v1310_v22 }
  0xd1   :  { %v572_v41 = vmul.f32 %v516_v39, %v1355_v6  ;;  %v404_v37 = vadd.f32 %v403_v26, %v1497_v49  ;;  %v522_v28 = vrot.slane %v521_v35, 2  ;;  %v388_v42 = vadd.f32 %v387_v55, %v386_v0 }
  0xd2   :  { %v1505_v59 = vadd.f32 1e-05, %v571_v50  ;;  %v397_v60 = vadd.f32 %v396_v13, %v395_v38  ;;  %v530_v61 = vadd.f32 %v529_v36, %v528_v21  ;;  %v413_v63 = vadd.f32 %v412_v46, %v1503_v58 }
  0xd3   :  { %v1507_v57 = vadd.f32 1e-05, %v572_v41  ;;  %v405_v62 = vrot.slane %v404_v37, 4  ;;  %v523_v5 = vadd.f32 %v522_v28, %v521_v35  ;;  %v389_v7 = vrot.slane %v388_v42, 2 }
  0xd4   :  { %1116 = vrsqrt.f32 %v1505_v59  ;;  %v531_v11 = vrot.slane %v530_v61, 2  ;;  %v398_v22 = vrot.slane %v397_v60, 2  ;;  %v414_v27 = vrot.slane %v413_v63, 4 }
  0xd5   :  { %1118 = vrsqrt.f32 %v1507_v57  ;;  %v524_v12 = vrot.slane %v523_v5, 1  ;;  %v390_v14 = vadd.f32 %v389_v7, %v388_v42  ;;  %v406_v26 = vadd.f32 %v405_v62, %v404_v37 }
  0xd6   :  { %v532_v17 = vadd.f32 %v531_v11, %v530_v61  ;;  %v399_v0 = vadd.f32 %v398_v22, %v397_v60  ;;  %v1512_v46 = vadd.f32 %v414_v27, %v413_v63  ;;  %vm593_vm3 = vweird.f32 %v1505_v59 }
  0xd7   :  { %v525_v38 = vadd.f32 %v524_v12, %v523_v5  ;;  %v391_v32 = vrot.slane %v390_v14, 1  ;;  %v407_v39 = vrot.slane %v406_v26, 2  ;;  %vm603_vm4 = vweird.f32 %v1507_v57  ;;  %v1529_v12 = vpop.permute.xlu2 %708 }
  0xd8   :  { %v533_v21 = vrot.slane %v532_v17, 1  ;;  %v400_v52 = vrot.slane %v399_v0, 1  ;;  %v416_v7 = vrot.slane %v1512_v46, 2 }
  0xd9   :  { %v573_v35 = vmul.f32 %v525_v38, %v1355_v6  ;;  %v392_v55 = vadd.f32 %v391_v32, %v390_v14  ;;  %v408_v61 = vadd.f32 %v407_v39, %v406_v26 }
  0xda   :  { %v1117_v50 = vpop.eup %1116  ;;  %v534_v36 = vadd.f32 %v533_v21, %v532_v17  ;;  %v401_v37 = vadd.f32 %v400_v52, %v399_v0 }
  0xdb   :  { %v1119_v13 = vpop.eup %1118  ;;  %v588_v41 = vmul.f32 %v1117_v50, %v1505_v59  ;;  %v1519_v42 = vadd.f32 1e-05, %v573_v35  ;;  %v431_v60 = vmul.f32 %v1355_v6, %v392_v55  ;;  %vm594_vm5 = vweird.f32 %v1117_v50 }
  0xdc   :  { %v598_v28 = vmul.f32 %v1119_v13, %v1507_v57  ;;  %v574_v63 = vmul.f32 %v534_v36, %v1355_v6  ;;  %v432_v5 = vmul.f32 %v1355_v6, %v401_v37  ;;  %v409_v21 = vrot.slane %v408_v61, 1  ;;  %vm595_vm7 = vmor %vm593_vm3, %vm594_vm5 }
  0xdd   :  { %v589_v62 = vmul.f32 %v1117_v50, %v588_v41  ;;  %1120 = vrsqrt.f32 %v1519_v42  ;;  %v1527_v22 = vsub.f32 %v1360_v29, %v431_v60  ;;  %v1534_v26 = vsub.f32 %v1403_v30, %v431_v60 }
  0xde   :  { %v599_v11 = vmul.f32 %v1119_v13, %v598_v28  ;;  %v1531_v27 = vadd.f32 1e-05, %v574_v63  ;;  %v1537_v17 = vsub.f32 %v1423_v3, %v431_v60  ;;  %v1540_v38 = vsub.f32 %v1485_v8, %v431_v60 }
  0xdf   :  { %v590_v14 = vmul.f32 0.5, %v589_v62  ;;  %v471_v32 = vmul.f32 %v1527_v22, %v1527_v22  ;;  %v1545_v29 = vsub.f32 %v1363_v15, %v432_v5  ;;  %v479_v30 = vmul.f32 %v1534_v26, %v1534_v26 }
  0xe0   :  { %v600_v0 = vmul.f32 0.5, %v599_v11  ;;  %1122 = vrsqrt.f32 %v1531_v27  ;;  %vm604_vm6 = vweird.f32 %v1119_v13  ;;  %v487_v3 = vmul.f32 %v1537_v17, %v1537_v17 }
  0xe1   :  { %v591_v39 = vsub.f32 1.5, %v590_v14  ;;  %v1553_v8 = vsub.f32 %v1410_v53, %v432_v5  ;;  %v495_v15 = vmul.f32 %v1540_v38, %v1540_v38  ;;  %v535_v55 = vadd.f32 %v479_v30, %v471_v32  ;;  %vm605_vm8 = vmor %vm603_vm4, %vm604_vm6 }
  0xe2   :  { %v601_v52 = vsub.f32 1.5, %v600_v0  ;;  %v1558_v41 = vsub.f32 %v1433_v10, %v432_v5  ;;  %v1564_v28 = vsub.f32 %v1488_v9, %v432_v5  ;;  %v472_v53 = vmul.f32 %v1545_v29, %v1545_v29 }
  0xe3   :  { %v592_v35 = vmul.f32 %v1117_v50, %v591_v39  ;;  %v1121_v36 = vpop.eup %1120  ;;  %v480_v60 = vmul.f32 %v1553_v8, %v1553_v8  ;;  %v536_v63 = vadd.f32 %v535_v55, %v487_v3  ;;  %v410_v59 = vadd.f32 %v409_v21, %v408_v61 }
  0xe4   :  { %v602_v37 = vmul.f32 %v1119_v13, %v601_v52  ;;  %v608_v10 = vmul.f32 %v1121_v36, %v1519_v42  ;;  %vm613_vm9 = vweird.f32 %v1519_v42  ;;  %vm614_vm10 = vweird.f32 %v1121_v36 }
  0xe5   :  { %v1570_v62 = vsel %vm595_vm7, %v1117_v50, %v592_v35  ;;  %v537_v0 = vadd.f32 %v536_v63, %v495_v15  ;;  %v488_v57 = vmul.f32 %v1558_v41, %v1558_v41  ;;  %vm623_vm12 = vweird.f32 %v1531_v27  ;;  %vm615_vm13 = vmor %vm613_vm9, %vm614_vm10 }
  0xe6   :  { %v683_v11 = vmul.f32 %v1570_v62, %v1372_v34  ;;  %v1577_v9 = vsel %vm605_vm8, %v1119_v13, %v602_v37  ;;  %v1123_v5 = vpop.eup %1122  ;;  %v691_v50 = vmul.f32 %v1570_v62, %v1387_v16  ;;  %v609_v14 = vmul.f32 %v1121_v36, %v608_v10  ;;  %v1587_v13 = vpop.permute.xlu2 %712 }
  0xe7   :  { %v684_v61 = vmul.f32 %v1577_v9, %v1381_v44  ;;  %v618_v32 = vmul.f32 %v1123_v5, %v1531_v27  ;;  %vm624_vm11 = vweird.f32 %v1123_v5  ;;  %v544_v34 = vadd.f32 %v480_v60, %v472_v53 }
  0xe8   :  { %v610_v39 = vmul.f32 0.5, %v609_v14  ;;  %v538_v30 = vrot.slane %v537_v0, 4  ;;  %v496_v16 = vmul.f32 %v1564_v28, %v1564_v28  ;;  %v433_v21 = vmul.f32 %v1355_v6, %v410_v59  ;;  %vm625_vm14 = vmor %vm623_vm12, %vm624_vm11 }
  0xe9   :  { %v619_v52 = vmul.f32 %v1123_v5, %v618_v32  ;;  %v545_v3 = vadd.f32 %v544_v34, %v488_v57  ;;  %v417_v35 = vadd.f32 %v416_v7, %v1512_v46  ;;  %v731_v44 = vmul.f32 %v1529_v12, %v683_v11 }
  0xea   :  { %v611_v15 = vsub.f32 1.5, %v610_v39  ;;  %v539_v55 = vadd.f32 %v538_v30, %v537_v0  ;;  %v1596_v37 = vsub.f32 %v1384_v45, %v433_v21  ;;  %v1599_v53 = vsub.f32 %v1413_v54, %v433_v21 }
  0xeb   :  { %v620_v60 = vmul.f32 0.5, %v619_v52  ;;  %v546_v10 = vadd.f32 %v545_v3, %v496_v16  ;;  %v1602_v63 = vsub.f32 %v1474_v56, %v433_v21  ;;  %v1605_v59 = vsub.f32 %v1497_v49, %v433_v21  ;;  %v1623_v21 = vpop.permute.xlu1 %760  ;;  %v1625_v52 = vpop.permute.xlu0 %756 }
  0xec   :  { %v612_v14 = vmul.f32 %v1121_v36, %v611_v15  ;;  %v540_v46 = vrot.slane %v539_v55, 2  ;;  %v473_v7 = vmul.f32 %v1596_v37, %v1596_v37  ;;  %v481_v45 = vmul.f32 %v1599_v53, %v1599_v53 }
  0xed   :  { %v621_v54 = vsub.f32 1.5, %v620_v60  ;;  %v547_v11 = vrot.slane %v546_v10, 4  ;;  %v489_v56 = vmul.f32 %v1602_v63, %v1602_v63  ;;  %v739_v49 = vmul.f32 %v1587_v13, %v691_v50 }
  0xee   :  { %v1617_v0 = vsel %vm615_vm13, %v1121_v36, %v612_v14  ;;  %v541_v57 = vadd.f32 %v540_v46, %v539_v55  ;;  %v553_v32 = vadd.f32 %v481_v45, %v473_v7  ;;  %v418_v34 = vrot.slane %v417_v35, 1  ;;  %v1635_v60 = vpop.permute.xlu2 %700 }
  0xef   :  { %v692_v39 = vmul.f32 %v1577_v9, %v1396_v19  ;;  %v622_v30 = vmul.f32 %v1123_v5, %v621_v54  ;;  %v548_v16 = vadd.f32 %v547_v11, %v546_v10  ;;  %v497_v42 = vmul.f32 %v1605_v59, %v1605_v59 }
  0xf0   :  { %v542_v3 = vrot.slane %v541_v57, 1  ;;  %v554_v15 = vadd.f32 %v553_v32, %v489_v56  ;;  %v419_v50 = vadd.f32 %v418_v34, %v417_v35  ;;  %v779_v36 = vadd.f32 %v1625_v52, %v731_v44 }
  0xf1   :  { %v1630_v55 = vmul.f32 %v1617_v0, %v1442_v25  ;;  %v549_v19 = vrot.slane %v548_v16, 2  ;;  %v787_v10 = vadd.f32 %v1623_v21, %v739_v49  ;;  %v732_v14 = vmul.f32 %v1529_v12, %v684_v61 }
  0xf2   :  { %v1641_v35 = vmul.f32 %v1617_v0, %v1449_v20  ;;  %v1643_v44 = vsel %vm625_vm14, %v1123_v5, %v622_v30  ;;  %v543_v46 = vadd.f32 %v542_v3, %v541_v57  ;;  %v555_v25 = vadd.f32 %v554_v15, %v497_v42 }
  0xf3   :  { %v550_v7 = vadd.f32 %v549_v19, %v548_v16  ;;  %v434_v45 = vmul.f32 %v1355_v6, %v419_v50  ;;  %v811_v27 = vmax.f32 %v779_v36, 0.0  ;;  %v819_v54 = vmax.f32 %v787_v10, 0.0  ;;  %v1675_v36 = vpop.permute.xlu1 %704 }
  0xf4   :  { %v575_v11 = vmul.f32 %v543_v46, %v1355_v6  ;;  %v556_v56 = vrot.slane %v555_v25, 4  ;;  %v740_v49 = vmul.f32 %v1587_v13, %v692_v39  ;;  %v780_v61 = vadd.f32 %v1625_v52, %v732_v14 }
  0xf5   :  { %v551_v32 = vrot.slane %v550_v7, 1  ;;  %v1650_v20 = vsub.f32 %v1394_v18, %v434_v45  ;;  %v1653_v5 = vsub.f32 %v1420_v2, %v434_v45  ;;  %v1656_v57 = vsub.f32 %v1482_v1, %v434_v45 }
  0xf6   :  { %v1658_v34 = vadd.f32 1e-05, %v575_v11  ;;  %v557_v30 = vadd.f32 %v556_v56, %v555_v25  ;;  %v1661_v16 = vsub.f32 %v1503_v58, %v434_v45  ;;  %v836_v42 = vpack.c.bf16 %v819_v54, %v811_v27  ;;  %v1686_v54 = vpop.permute.xlu2 %748  ;;  %v1688_v11 = vpop.permute.xlu0 %752 }
  0xf7   :  { %v686_v39 = vmul.f32 %v1643_v44, %v1464_v51  ;;  %v552_v3 = vadd.f32 %v551_v32, %v550_v7  ;;  %v474_v18 = vmul.f32 %v1650_v20, %v1650_v20  ;;  %v482_v2 = vmul.f32 %v1653_v5, %v1653_v5 }
  0xf8   :  { %1124 = vrsqrt.f32 %v1658_v34  ;;  %v558_v1 = vrot.slane %v557_v30, 2  ;;  %v490_v15 = vmul.f32 %v1656_v57, %v1656_v57  ;;  %v498_v58 = vmul.f32 %v1661_v16, %v1661_v16  ;;  %860 = vmatpush.bf16.msra.mxu0 %v836_v42 }
  0xf9   :  { %v576_v50 = vmul.f32 %v552_v3, %v1355_v6  ;;  %v562_v51 = vadd.f32 %v482_v2, %v474_v18  ;;  %v788_v19 = vadd.f32 %v1623_v21, %v740_v49  ;;  %v812_v10 = vmax.f32 %v780_v61, 0.0 }
  0xfa   :  { %v559_v14 = vadd.f32 %v558_v1, %v557_v30  ;;  %v667_v46 = vmul.f32 %v1570_v62, %v1366_v31  ;;  %v675_v25 = vmul.f32 %v1570_v62, %v1369_v33  ;;  %v668_v7 = vmul.f32 %v1577_v9, %v1375_v40 }
  0xfb   :  { %v1684_v45 = vadd.f32 1e-05, %v576_v50  ;;  %v563_v27 = vadd.f32 %v562_v51, %v490_v15  ;;  %v820_v56 = vmax.f32 %v788_v19, 0.0  ;;  %v676_v49 = vmul.f32 %v1577_v9, %v1378_v43 }
  0xfc   :  { %v560_v61 = vrot.slane %v559_v14, 1  ;;  %v715_v31 = vmul.f32 %v1635_v60, %v667_v46  ;;  %v723_v32 = vmul.f32 %v1675_v36, %v675_v25  ;;  %v716_v33 = vmul.f32 %v1635_v60, %v668_v7 }
  0xfd   :  { %v694_v40 = vmul.f32 %v1643_v44, %v1467_v4  ;;  %1126 = vrsqrt.f32 %v1684_v45  ;;  %v564_v62 = vadd.f32 %v563_v27, %v498_v58  ;;  %v837_v30 = vpack.c.bf16 %v820_v56, %v812_v10 }
  0xfe   :  { %v1125_v42 = vpop.eup %1124  ;;  %v561_v3 = vadd.f32 %v560_v61, %v559_v14  ;;  %v763_v18 = vadd.f32 %v1686_v54, %v715_v31  ;;  %v771_v43 = vadd.f32 %v1688_v11, %v723_v32  ;;  %v724_v9 = vmul.f32 %v1675_v36, %v676_v49 }
  0xff   :  { %v628_v2 = vmul.f32 %v1125_v42, %v1658_v34  ;;  %vm633_vm15 = vweird.f32 %v1658_v34  ;;  %v565_v1 = vrot.slane %v564_v62, 4  ;;  %873 = vmatpush.bf16.msra.mxu1 %v837_v30  ;;  %v764_v4 = vadd.f32 %v1686_v54, %v716_v33 }
 0x100   :  { %v577_v15 = vmul.f32 %v561_v3, %v1355_v6  ;;  %v795_v58 = vmax.f32 %v763_v18, 0.0  ;;  %v803_v50 = vmax.f32 %v771_v43, 0.0  ;;  %v772_v51 = vadd.f32 %v1688_v11, %v724_v9 }
 0x101   :  { %v629_v19 = vmul.f32 %v1125_v42, %v628_v2  ;;  %v566_v10 = vadd.f32 %v565_v1, %v564_v62  ;;  %v796_v14 = vmax.f32 %v764_v4, 0.0  ;;  %v733_v46 = vmul.f32 %v1529_v12, %v1630_v55 }
 0x102   :  { %v1708_v25 = vadd.f32 1e-05, %v577_v15  ;;  %v828_v7 = vpack.c.bf16 %v803_v50, %v795_v58  ;;  %v804_v27 = vmax.f32 %v772_v51, 0.0  ;;  %v741_v56 = vmul.f32 %v1587_v13, %v1641_v35 }
 0x103   :  { %v1127_v49 = vpop.eup %1126  ;;  %v630_v61 = vmul.f32 0.5, %v629_v19  ;;  %v567_v31 = vrot.slane %v566_v10, 2  ;;  %v781_v32 = vadd.f32 %v1625_v52, %v733_v46  ;;  %v734_v33 = vmul.f32 %v1529_v12, %v686_v39 }
 0x104   :  { %vm634_vm0 = vweird.f32 %v1125_v42  ;;  %v638_v62 = vmul.f32 %v1127_v49, %v1684_v45  ;;  %vm643_vm1 = vweird.f32 %v1684_v45  ;;  %1128 = vrsqrt.f32 %v1708_v25  ;;  %861 = vmatpush.bf16.msra.mxu0 %v828_v7 }
 0x105   :  { %v631_v55 = vsub.f32 1.5, %v630_v61  ;;  %v568_v30 = vadd.f32 %v567_v31, %v566_v10  ;;  %v829_v3 = vpack.c.bf16 %v804_v27, %v796_v14  ;;  %v789_v35 = vadd.f32 %v1623_v21, %v741_v56  ;;  %vm635_vm2 = vmor %vm633_vm15, %vm634_vm0 }
 0x106   :  { %v639_v18 = vmul.f32 %v1127_v49, %v638_v62  ;;  %v813_v43 = vmax.f32 %v781_v32, 0.0  ;;  %v742_v9 = vmul.f32 %v1587_v13, %v694_v40  ;;  %v782_v2 = vadd.f32 %v1625_v52, %v734_v33 }
 0x107   :  { %v632_v39 = vmul.f32 %v1125_v42, %v631_v55  ;;  %v569_v1 = vrot.slane %v568_v30, 1  ;;  %874 = vmatpush.bf16.msra.mxu1 %v829_v3  ;;  %v821_v4 = vmax.f32 %v789_v35, 0.0  ;;  %v669_v15 = vmul.f32 %v1617_v0, %v1436_v23 }
 0x108   :  { %v640_v58 = vmul.f32 0.5, %v639_v18  ;;  %v790_v50 = vadd.f32 %v1623_v21, %v742_v9  ;;  %v814_v51 = vmax.f32 %v782_v2, 0.0  ;;  %v677_v40 = vmul.f32 %v1617_v0, %v1439_v24 }
 0x109   :  { %v636_v19 = vsel %vm635_vm2, %v1125_v42, %v632_v39  ;;  %v570_v10 = vadd.f32 %v569_v1, %v568_v30  ;;  %v838_v14 = vpack.c.bf16 %v821_v4, %v813_v43  ;;  %v717_v46 = vmul.f32 %v1635_v60, %v669_v15  ;;  %v844_v15 = vld [vmem:[%s1835_s4] sm:$0x1f]  ;;  %s1191_s4 = smov [#allocation5]  }
 0x10a   :  { %v1129_v7 = vpop.eup %1128  ;;  %v687_v27 = vmul.f32 %v636_v19, %v1537_v17  ;;  %v641_v23 = vsub.f32 1.5, %v640_v58  ;;  %vm644_vm3 = vweird.f32 %v1127_v49  ;;  %v822_v56 = vmax.f32 %v790_v50, 0.0  ;;  %847 = vperm.xlu1 %1112, %v844_v15   ;;  %s971_s12 = sshll.u32 %s1191_s4, 4  ;;  %s972_s12 = int_to_ptr.vmem [resolvable:$true] %s971_s12 }
 0x10b   :  { %v695_v34 = vmul.f32 %v636_v19, %v1540_v38  ;;  %v648_v61 = vmul.f32 %v1129_v7, %v1708_v25  ;;  %vm653_vm4 = vweird.f32 %v1708_v25  ;;  %v578_v31 = vmul.f32 %v570_v10, %v1355_v6  ;;  %886 = vmatpush.bf16.msra.mxu2 %v838_v14  ;;  %vm645_vm5 = vmor %vm643_vm1, %vm644_vm3 }
 0x10c   :  { %v725_v24 = vmul.f32 %v1675_v36, %v677_v40  ;;  %v642_v0 = vmul.f32 %v1127_v49, %v641_v23  ;;  %v839_v42 = vpack.c.bf16 %v822_v56, %v814_v51  ;;  %v765_v32 = vadd.f32 %v1686_v54, %v717_v46 }
 0x10d   :  { %v670_v17 = vmul.f32 %v1643_v44, %v1458_v47  ;;  %v649_v38 = vmul.f32 %v1129_v7, %v648_v61  ;;  %v1740_v33 = vadd.f32 1e-05, %v578_v31  ;;  %v678_v6 = vmul.f32 %v1643_v44, %v1461_v48  ;;  %v1749_v47 = vld [vmem:[%s1834_s3] sm:$0x7] }
 0x10e   :  { %v773_v62 = vadd.f32 %v1688_v11, %v725_v24  ;;  %v646_v55 = vsel %vm645_vm5, %v1127_v49, %v642_v0  ;;  %899 = vmatpush.bf16.msra.mxu3 %v839_v42  ;;  %v797_v30 = vmax.f32 %v765_v32, 0.0  ;;  %vm850_vm6 = vcmask 261120  }
 0x10f   :  { %v718_v3 = vmul.f32 %v1635_v60, %v670_v17  ;;  %v688_v45 = vmul.f32 %v646_v55, %v1558_v41  ;;  %v696_v35 = vmul.f32 %v646_v55, %v1564_v28  ;;  %v650_v18 = vmul.f32 0.5, %v649_v38  ;;  %1071 = vmatmul.msk.bf16.vlgmr.msra.gmra.mxu0 %vm850_vm6, %v1749_v47  ;;  %1072 = vmatmul.msk.bf16.vlgmr.msra.gmra.mxu1 %vm850_vm6, %v1749_v47 }
 0x110   :  { %1130 = vrsqrt.f32 %v1740_v33  ;;  %vm654_vm7 = vweird.f32 %v1129_v7  ;;  %v805_v48 = vmax.f32 %v773_v62, 0.0  ;;  %v726_v44 = vmul.f32 %v1675_v36, %v678_v6 }
 0x111   :  { %v766_v49 = vadd.f32 %v1686_v54, %v718_v3  ;;  %v651_v43 = vsub.f32 1.5, %v650_v18  ;;  %v735_v41 = vmul.f32 %v1529_v12, %v687_v27  ;;  %v743_v28 = vmul.f32 %v1587_v13, %v695_v34  ;;  %vm655_vm8 = vmor %vm653_vm4, %vm654_vm7 }
 0x112   :  { %v736_v9 = vmul.f32 %v1529_v12, %v688_v45  ;;  %v830_v2 = vpack.c.bf16 %v805_v48, %v797_v30  ;;  %v774_v39 = vadd.f32 %v1688_v11, %v726_v44  ;;  %v744_v4 = vmul.f32 %v1587_v13, %v696_v35 }
 0x113   :  { %v798_v1 = vmax.f32 %v766_v49, 0.0  ;;  %v652_v58 = vmul.f32 %v1129_v7, %v651_v43  ;;  %v783_v50 = vadd.f32 %v1625_v52, %v735_v41  ;;  %v791_v51 = vadd.f32 %v1623_v21, %v743_v28 }
 0x114   :  { %v784_v40 = vadd.f32 %v1625_v52, %v736_v9  ;;  %887 = vmatpush.bf16.msra.mxu2 %v830_v2  ;;  %v806_v10 = vmax.f32 %v774_v39, 0.0  ;;  %v792_v14 = vadd.f32 %v1623_v21, %v744_v4  ;;  %v671_v46 = vmul.f32 %v636_v19, %v1527_v22 }
 0x115   :  { %v679_v27 = vmul.f32 %v636_v19, %v1534_v26  ;;  %v656_v56 = vsel %vm655_vm8, %v1129_v7, %v652_v58  ;;  %v815_v34 = vmax.f32 %v783_v50, 0.0  ;;  %v823_v61 = vmax.f32 %v791_v51, 0.0 }
 0x116   :  { %v1131_v23 = vpop.eup %1130  ;;  %v816_v31 = vmax.f32 %v784_v40, 0.0  ;;  %v689_v24 = vmul.f32 %v656_v56, %v1602_v63  ;;  %v697_v0 = vmul.f32 %v656_v56, %v1605_v59  ;;  %vm663_vm9 = vweird.f32 %v1740_v33 }
 0x117   :  { %v658_v25 = vmul.f32 %v1131_v23, %v1740_v33  ;;  %v831_v42 = vpack.c.bf16 %v806_v10, %v798_v1  ;;  %1073 = vmatmul.msk.bf16.vlgmr.msra.gmra.mxu2 %vm850_vm6, %v1749_v47  ;;  %v840_v22 = vpack.c.bf16 %v823_v61, %v815_v34  ;;  %v824_v32 = vmax.f32 %v792_v14, 0.0 }
 0x118   :  { %v719_v26 = vmul.f32 %v1635_v60, %v671_v46  ;;  %v727_v7 = vmul.f32 %v1675_v36, %v679_v27  ;;  %v672_v17 = vmul.f32 %v646_v55, %v1545_v29  ;;  %v680_v63 = vmul.f32 %v646_v55, %v1553_v8 }
 0x119   :  { %v659_v19 = vmul.f32 %v1131_v23, %v658_v25  ;;  %vm664_vm10 = vweird.f32 %v1131_v23  ;;  %900 = vmatpush.bf16.msra.mxu3 %v831_v42  ;;  %912 = vmatpush.bf16.msrb.mxu0 %v840_v22  ;;  %v841_v59 = vpack.c.bf16 %v824_v32, %v816_v31  ;;  %v737_v62 = vmul.f32 %v1529_v12, %v689_v24 }
 0x11a   :  { %v767_v38 = vadd.f32 %v1686_v54, %v719_v26  ;;  %v775_v30 = vadd.f32 %v1688_v11, %v727_v7  ;;  %v720_v3 = vmul.f32 %v1635_v60, %v672_v17  ;;  %v728_v45 = vmul.f32 %v1675_v36, %v680_v63  ;;  %vm665_vm11 = vmor %vm663_vm9, %vm664_vm10 }
 0x11b   :  { %v660_v6 = vmul.f32 0.5, %v659_v19  ;;  %925 = vmatpush.bf16.msrb.mxu1 %v841_v59  ;;  %v745_v29 = vmul.f32 %v1587_v13, %v697_v0  ;;  %v785_v8 = vadd.f32 %v1625_v52, %v737_v62  ;;  %v673_v55 = vmul.f32 %v656_v56, %v1596_v37 }
 0x11c   :  { %v799_v35 = vmax.f32 %v767_v38, 0.0  ;;  %1074 = vmatmul.msk.bf16.vlgmr.msra.gmra.mxu3 %vm850_vm6, %v1749_v47  ;;  %v807_v48 = vmax.f32 %v775_v30, 0.0  ;;  %v768_v44 = vadd.f32 %v1686_v54, %v720_v3  ;;  %v776_v49 = vadd.f32 %v1688_v11, %v728_v45 }
 0x11d   :  { %v661_v18 = vsub.f32 1.5, %v660_v6  ;;  %v793_v43 = vadd.f32 %v1623_v21, %v745_v29  ;;  %v817_v41 = vmax.f32 %v785_v8, 0.0  ;;  %v681_v28 = vmul.f32 %v656_v56, %v1599_v53 }
 0x11e   :  { %v721_v9 = vmul.f32 %v1635_v60, %v673_v55  ;;  %v832_v39 = vpack.c.bf16 %v807_v48, %v799_v35  ;;  %v800_v1 = vmax.f32 %v768_v44, 0.0  ;;  %v808_v37 = vmax.f32 %v776_v49, 0.0 }
 0x11f   :  { %v662_v2 = vmul.f32 %v1131_v23, %v661_v18  ;;  %v825_v4 = vmax.f32 %v793_v43, 0.0  ;;  %v729_v15 = vmul.f32 %v1675_v36, %v681_v28 }
 0x120   :  { %v769_v58 = vadd.f32 %v1686_v54, %v721_v9  ;;  %913 = vmatpush.bf16.msrb.mxu0 %v832_v39  ;;  %v833_v51 = vpack.c.bf16 %v808_v37, %v800_v1 }
 0x121   :  { %v666_v50 = vsel %vm665_vm11, %v1131_v23, %v662_v2  ;;  %v842_v10 = vpack.c.bf16 %v825_v4, %v817_v41  ;;  %v777_v14 = vadd.f32 %v1688_v11, %v729_v15 }
 0x122   :  { %v690_v53 = vmul.f32 %v666_v50, %v1656_v57  ;;  %v698_v40 = vmul.f32 %v666_v50, %v1661_v16  ;;  %926 = vmatpush.bf16.msrb.mxu1 %v833_v51  ;;  %v801_v46 = vmax.f32 %v769_v58, 0.0  ;;  %v674_v33 = vmul.f32 %v666_v50, %v1650_v20 }
 0x123   :  { %v682_v27 = vmul.f32 %v666_v50, %v1653_v5  ;;  %938 = vmatpush.bf16.msrb.mxu2 %v842_v10  ;;  %v809_v34 = vmax.f32 %v777_v14, 0.0  ;;  %1075 = vmatmul.msk.bf16.vlgmr.msrb.gmra.mxu0 %vm850_vm6, %v1749_v47 }
 0x124   :  { %v738_v56 = vmul.f32 %v1529_v12, %v690_v53  ;;  %v746_v23 = vmul.f32 %v1587_v13, %v698_v40  ;;  %v722_v57 = vmul.f32 %v1635_v60, %v674_v33 }
 0x125   :  { %v730_v16 = vmul.f32 %v1675_v36, %v682_v27  ;;  %v834_v20 = vpack.c.bf16 %v809_v34, %v801_v46  ;;  %1076 = vmatmul.msk.bf16.vlgmr.msrb.gmra.mxu1 %vm850_vm6, %v1749_v47 }
 0x126   :  { %v786_v61 = vadd.f32 %v1625_v52, %v738_v56  ;;  %v794_v31 = vadd.f32 %v1623_v21, %v746_v23  ;;  %v770_v12 = vadd.f32 %v1686_v54, %v722_v57 }
 0x127   :  { %v778_v13 = vadd.f32 %v1688_v11, %v730_v16  ;;  %939 = vmatpush.bf16.msrb.mxu2 %v834_v20 }
 0x128   :  { %v818_v5 = vmax.f32 %v786_v61, 0.0  ;;  %v826_v24 = vmax.f32 %v794_v31, 0.0  ;;  %v802_v25 = vmax.f32 %v770_v12, 0.0 }
 0x129   :  { %v810_v60 = vmax.f32 %v778_v13, 0.0 }
 0x12a   :  { %v843_v0 = vpack.c.bf16 %v826_v24, %v818_v5  ;;  %1077 = vmatmul.msk.bf16.vlgmr.msrb.gmra.mxu2 %vm850_vm6, %v1749_v47 }
 0x12b   :  { %v835_v52 = vpack.c.bf16 %v810_v60, %v802_v25 }
 0x12c   :  { %951 = vmatpush.bf16.msrb.mxu3 %v843_v0 }
 0x130   :  { %952 = vmatpush.bf16.msrb.mxu3 %v835_v52 }
 0x133   :  { %1078 = vmatmul.msk.bf16.vlgmr.msrb.gmra.mxu3 %vm850_vm6, %v1749_v47 }
 0x17c   :  { %v848_v21 = vpop.permute.xlu1 %847 }
 0x18c   :  { %v863_v36 = vpop.f32.mrf.mxu0  ;;  %v876_v54 = vpop.f32.mrf.mxu1 }
 0x18d   :  { %v864_v42 = vadd.f32 %v863_v36, %v848_v21  ;;  %v877_v11 = vadd.f32 %v876_v54, %v848_v21 }
 0x18f   :  { %958 = vst [vmem:[#allocation5] sm:$0x1f] %v864_v42 }
 0x190   :  { %959 = vst [vmem:[#allocation5 + $0x8] sm:$0x1f] %v877_v11 }
 0x194   :  { %v865_v22 = vpop.f32.mrf.mxu0  ;;  %v878_v32 = vpop.f32.mrf.mxu1 }
 0x19a   :  { %v889_v26 = vpop.f32.mrf.mxu2 }
 0x19b   :  { %v890_v19 = vadd.f32 %v889_v26, %v848_v21 }
 0x19d   :  { %960 = vst [vmem:[#allocation5 + $0x10] sm:$0x1f] %v890_v19 }
 0x19f   :  { %v902_v7 = vpop.f32.mrf.mxu3 }
 0x1a0   :  { %v903_v17 = vadd.f32 %v902_v7, %v848_v21  ;;  %v915_v63 = vpop.f32.mrf.mxu0 }
 0x1a1   :  { %v916_v59 = vadd.f32 %v915_v63, %v848_v21 }
 0x1a2   :  { %961 = vst [vmem:[#allocation5 + $0x18] sm:$0x1f] %v903_v17  ;;  %v891_v38 = vpop.f32.mrf.mxu2  ;;  %v928_v62 = vpop.f32.mrf.mxu1 }
 0x1a3   :  { %962 = vst [vmem:[#allocation5 + $0x20] sm:$0x1f] %v916_v59  ;;  %v929_v47 = vadd.f32 %v928_v62, %v848_v21 }
 0x1a5   :  { %963 = vst [vmem:[#allocation5 + $0x28] sm:$0x1f] %v929_v47 }
 0x1a7   :  { %v904_v6 = vpop.f32.mrf.mxu3 }
 0x1a8   :  { %v917_v30 = vpop.f32.mrf.mxu0 }
 0x1aa   :  { %v930_v3 = vpop.f32.mrf.mxu1 }
 0x1ad   :  { %v941_v45 = vpop.f32.mrf.mxu2 }
 0x1ae   :  { %v942_v35 = vadd.f32 %v941_v45, %v848_v21 }
 0x1b0   :  { %964 = vst [vmem:[#allocation5 + $0x30] sm:$0x1f] %v942_v35 }
 0x1b5   :  { %v943_v8 = vpop.f32.mrf.mxu2 }
 0x1b6   :  { %v954_v29 = vpop.f32.mrf.mxu3 }
 0x1b7   :  { %v955_v55 = vadd.f32 %v954_v29, %v848_v21 }
 0x1b9   :  { %965 = vst [vmem:[#allocation5 + $0x38] sm:$0x1f] %v955_v55 }
 0x1ba   :  { %976 = dma.vmem_to_hbm [thread:$0]  %s972_s12, 1024, %s974_s15, [#allocation4]  }
 0x1be   :  { %v956_v18 = vpop.f32.mrf.mxu3 }
 0x1bf   :  { %1182 = dma.done.wait [#allocation4], 1024  }
 0x1c0   :  { %1183 = vsyncadd [#allocation4], 4294966272 }
 0x1c1   :  { %981 = vsyncpa [#allocation3], 1 }
 0x1c2   :  { %982 = vsyncpa [#allocation4], 1 }

</bundles_post_ra>
